<compile_context>
chip_gen: v7x
topology: tpu7x:2x2x1
jax: 0.10.0
libtpu: 0.0.40
codegen_flags: <defaults>
</compile_context>

<pallas_src>
import math
import numpy as np
import jax
import jax.numpy as jnp
from jax import lax
from jax.experimental import pallas as pl
from jax.experimental.pallas import tpu as pltpu


# --------------------------------------------------------------------------------------
# Pallas kernels
# --------------------------------------------------------------------------------------

def _make_decode_kernel(fs, TN, anchors_np):
    """Decode kernel factory.  Block refs: raw (c_blk, TN) -> pred (4, TN)."""
    A = anchors_np.shape[0]
    inv_fs = 1.0 / float(fs)

    def kernel(raw_ref, pred_ref):
        a_id = pl.program_id(1)          # anchor index
        sb = pl.program_id(2)            # spatial tile index

        # anchors are compile-time constants; select by grid index (scalar selects only)
        aw = jnp.float32(anchors_np[A - 1, 0])
        ah = jnp.float32(anchors_np[A - 1, 1])
        for k in range(A - 2, -1, -1):
            aw = jnp.where(a_id == k, jnp.float32(anchors_np[k, 0]), aw)
            ah = jnp.where(a_id == k, jnp.float32(anchors_np[k, 1]), ah)

        # absolute flattened spatial index of each lane in this tile
        lane = lax.broadcasted_iota(jnp.int32, (1, TN), 1) + sb * TN
        # exact lane // fs and lane % fs via float estimate + integer fixup
        q = jnp.floor(lane.astype(jnp.float32) * inv_fs).astype(jnp.int32)
        r = lane - q * fs
        q = q + (r >= fs).astype(jnp.int32) - (r < 0).astype(jnp.int32)
        r = lane - q * fs
        gx = r.astype(jnp.float32)       # column (x) index
        gy = q.astype(jnp.float32)       # row (y) index

        x = raw_ref[0:4, :]              # only the box channels are needed
        pred_ref[0:1, :] = jax.nn.sigmoid(x[0:1, :]) + gx
        pred_ref[1:2, :] = jax.nn.sigmoid(x[1:2, :]) + gy
        pred_ref[2:3, :] = jnp.exp(x[2:3, :]) * aw
        pred_ref[3:4, :] = jnp.exp(x[3:4, :]) * ah

    return kernel


def _make_loss_kernel(n_ch, S, TN, n_sp):
    """Loss kernel factory.  Block refs: raw/target/mask (n_ch, TN), scale (2, TN)."""
    needs_lane_mask = (S % TN) != 0
    single_spatial = (n_sp == 1)         # no accumulation loop -> skip zero-init

    def bce(x, t):
        # torch-style BCE with log clamped at -100
        return -(t * jnp.maximum(jnp.log(x), -100.0)
                 + (1.0 - t) * jnp.maximum(jnp.log(1.0 - x), -100.0))

    def kernel(raw_ref, tgt_ref, mask_ref, scale_ref, out_ref):
        x = raw_ref[...]                 # (n_ch, TN) raw logits
        t = tgt_ref[...]                 # (n_ch, TN) targets
        m = mask_ref[...]                # (n_ch, TN) tgt_mask with obj_mask at row 4
        sc = scale_ref[...]              # (2, TN)    tgt_scale

        # fused activation + masking with static row slices (no channel where-chains)
        xy_o = jax.nn.sigmoid(x[0:2, :]) * m[0:2, :]
        xy_t = t[0:2, :] * m[0:2, :]
        wh_o = x[2:4, :] * m[2:4, :] * sc
        wh_t = t[2:4, :] * m[2:4, :] * sc
        oc_o = jax.nn.sigmoid(x[4:, :]) * m[4:, :]     # row 0 = obj, rows 1.. = cls
        oc_t = t[4:, :] * m[4:, :]

        bce_xy = (sc * sc) * bce(xy_o, xy_t)
        bce_oc = bce(oc_o, oc_t)
        sq_xy = (xy_o - xy_t) ** 2
        sq_wh = (wh_o - wh_t) ** 2
        sq_oc = (oc_o - oc_t) ** 2

        if needs_lane_mask:              # guard padded lanes of a partial last tile
            lane = lax.broadcasted_iota(jnp.int32, (1, TN), 1) + pl.program_id(2) * TN
            ok = lane < S
            bce_xy = jnp.where(ok, bce_xy, 0.0)
            bce_oc = jnp.where(ok, bce_oc, 0.0)
            sq_xy = jnp.where(ok, sq_xy, 0.0)
            sq_wh = jnp.where(ok, sq_wh, 0.0)
            sq_oc = jnp.where(ok, sq_oc, 0.0)

        loss_xy = jnp.sum(bce_xy)
        loss_wh = 0.5 * jnp.sum(sq_wh)
        loss_obj = jnp.sum(bce_oc[0:1, :])
        loss_cls = jnp.sum(bce_oc[1:, :])
        loss_l2 = jnp.sum(sq_xy) + jnp.sum(sq_wh) + jnp.sum(sq_oc)

        # place the 5 partial sums into rows 0..4 of this (b, a) output block
        row = lax.broadcasted_iota(jnp.int32, (8, 128), 0)
        upd = (jnp.where(row == 0, loss_xy, 0.0)
               + jnp.where(row == 1, loss_wh, 0.0)
               + jnp.where(row == 2, loss_obj, 0.0)
               + jnp.where(row == 3, loss_cls, 0.0)
               + jnp.where(row == 4, loss_l2, 0.0))

        if single_spatial:
            out_ref[...] = upd
        else:
            @pl.when(pl.program_id(2) == 0)
            def _():
                out_ref[...] = jnp.zeros_like(out_ref)
            out_ref[...] += upd

    return kernel


def decode_pallas(raw, fs, anchors_np, TN):
    """raw: (B, A, n_ch, S) f32 -> pred: (B, A, 4, S) f32."""
    B, A, n_ch, S = raw.shape
    c_blk = n_ch if n_ch <= 8 else 8          # only rows 0..3 are used in-kernel
    n_sp = pl.cdiv(S, TN)
    kernel = _make_decode_kernel(fs, TN, anchors_np)
    return pl.pallas_call(
        kernel,
        out_shape=jax.ShapeDtypeStruct((B, A, 4, S), jnp.float32),
        grid=(B, A, n_sp),
        in_specs=[pl.BlockSpec((None, None, c_blk, TN), lambda b, a, s: (b, a, 0, s))],
        out_specs=pl.BlockSpec((None, None, 4, TN), lambda b, a, s: (b, a, 0, s)),
        compiler_params=pltpu.CompilerParams(
            dimension_semantics=("parallel", "parallel", "parallel")),
    )(raw)


def loss_pallas(raw, target, mask_full, tgt_scale, S, TN):
    """Inputs (B, A, n_ch|2, S) f32 -> 5 loss scalars (xy, wh, obj, cls, l2)."""
    B, A, n_ch, _ = raw.shape
    n_sp = pl.cdiv(S, TN)
    kernel = _make_loss_kernel(n_ch, S, TN, n_sp)
    spec_c = pl.BlockSpec((None, None, n_ch, TN), lambda b, a, s: (b, a, 0, s))
    spec_2 = pl.BlockSpec((None, None, 2, TN), lambda b, a, s: (b, a, 0, s))
    out = pl.pallas_call(
        kernel,
        out_shape=jax.ShapeDtypeStruct((B, A, 8, 128), jnp.float32),
        grid=(B, A, n_sp),
        in_specs=[spec_c, spec_c, spec_c, spec_2],
        # per-(b, a) resident output block -> B and A axes are truly parallel (megacore)
        out_specs=pl.BlockSpec((None, None, 8, 128), lambda b, a, s: (b, a, 0, 0)),
        compiler_params=pltpu.CompilerParams(
            dimension_semantics=("parallel", "parallel", "arbitrary")),
    )(raw, target, mask_full, tgt_scale)
    return jnp.sum(out[:, :, 0:5, 0], axis=(0, 1))   # (5,)


# --------------------------------------------------------------------------------------
# Plain-JAX glue: IoU helpers + build_target (data-dependent scatters, vectorized)
# --------------------------------------------------------------------------------------

def anchor_ciou_jax(a, b):
    """CIoU between boxes a (B, T, 4) and b (K, 4), both xyxy.  Returns (B, T, K).
    Mirrors torch bboxes_iou(xyxy=True, CIoU=True)."""
    tl = jnp.maximum(a[..., None, :2], b[None, None, :, :2])
    br = jnp.minimum(a[..., None, 2:], b[None, None, :, 2:])
    con_tl = jnp.minimum(a[..., None, :2], b[None, None, :, :2])
    con_br = jnp.maximum(a[..., None, 2:], b[None, None, :, 2:])
    rho2 = ((a[..., None, 0] + a[..., None, 2]
             - (b[None, None, :, 0] + b[None, None, :, 2])) ** 2 / 4
            + (a[..., None, 1] + a[..., None, 3]
               - (b[None, None, :, 1] + b[None, None, :, 3])) ** 2 / 4)
    w1 = a[..., 2] - a[..., 0]
    h1 = a[..., 3] - a[..., 1]
    w2 = b[:, 2] - b[:, 0]
    h2 = b[:, 3] - b[:, 1]
    area_a = jnp.prod(a[..., 2:] - a[..., :2], axis=-1)
    area_b = jnp.prod(b[:, 2:] - b[:, :2], axis=-1)
    en = jnp.prod((tl < br).astype(a.dtype), axis=-1)
    area_i = jnp.prod(br - tl, axis=-1) * en
    area_u = area_a[..., None] + area_b[None, None, :] - area_i
    iou = area_i / area_u
    c2 = jnp.sum((con_br - con_tl) ** 2, axis=-1) + 1e-16
    v = 4.0 / math.pi ** 2 * (jnp.arctan(w1 / h1)[..., None]
                              - jnp.arctan(w2 / h2)[None, None, :]) ** 2
    alpha = v / (1.0 - iou + v)
    return iou - (rho2 / c2 + v * alpha)


def pred_truth_iou_cm(pred_cm, truth_box):
    """IoU between channel-major preds (B, A, 4, S) and truth (B, T, 4), both xywh.
    Mirrors torch bboxes_iou(xyxy=False).  Returns (B, A, S, T)."""
    p_half = pred_cm[:, :, 2:4, :] * 0.5                       # (B, A, 2, S)
    p_tl = pred_cm[:, :, 0:2, :] - p_half
    p_br = pred_cm[:, :, 0:2, :] + p_half
    t_half = truth_box[:, :, 2:4] * 0.5                        # (B, T, 2)
    t_tl = (truth_box[:, :, 0:2] - t_half).transpose(0, 2, 1)  # (B, 2, T)
    t_br = (truth_box[:, :, 0:2] + t_half).transpose(0, 2, 1)
    tl = jnp.maximum(p_tl[..., None], t_tl[:, None, :, None, :])  # (B, A, 2, S, T)
    br = jnp.minimum(p_br[..., None], t_br[:, None, :, None, :])
    en = jnp.prod((tl < br).astype(pred_cm.dtype), axis=2)        # (B, A, S, T)
    area_i = jnp.prod(br - tl, axis=2) * en
    area_p = pred_cm[:, :, 2, :] * pred_cm[:, :, 3, :]            # (B, A, S)
    area_t = truth_box[:, :, 2] * truth_box[:, :, 3]              # (B, T)
    area_u = area_p[..., None] + area_t[:, None, None, :] - area_i
    return area_i / area_u


def build_target_jax(pred_cm, labels, B, fsize, n_ch, output_id, cfg):
    """pred_cm: (B, A, 4, fs*fs) channel-major decode output.
    Returns channel-major mask_full / tgt_scale / target for the loss kernel."""
    stride = cfg['strides'][output_id]
    A = cfg['n_anchors']
    n_classes = cfg['n_classes']
    masked_anchors = cfg['masked_anchors'][output_id]      # (A, 2) jnp
    ref_anchors = cfg['ref_anchors'][output_id]            # (9, 4) jnp
    anch_mask = cfg['anch_masks'][output_id]
    ignore_thre = cfg['ignore_thre']
    T = labels.shape[1]

    valid = labels.sum(axis=2) > 0                         # (B, T); valid labels come first
    tx = (labels[:, :, 2] + labels[:, :, 0]) / (stride * 2)
    ty = (labels[:, :, 3] + labels[:, :, 1]) / (stride * 2)
    tw = (labels[:, :, 2] - labels[:, :, 0]) / stride
    th = (labels[:, :, 3] - labels[:, :, 1]) / stride
    ti_ = tx.astype(jnp.int32)
    tj_ = ty.astype(jnp.int32)

    # anchor matching: truth boxes [0,0,w,h] vs ref anchors (xyxy, CIoU)
    zeros = jnp.zeros_like(tw)
    tb_anchor = jnp.stack([zeros, zeros, tw, th], axis=-1)          # (B, T, 4)
    anchor_ious = anchor_ciou_jax(tb_anchor, ref_anchors)           # (B, T, 9)
    best_n_all = jnp.argmax(anchor_ious, axis=2)
    best_n = best_n_all % 3
    best_n_mask = ((best_n_all == anch_mask[0]) | (best_n_all == anch_mask[1])
                   | (best_n_all == anch_mask[2]))
    has_match = jnp.any(valid & best_n_mask, axis=1)

    # pred ignore mask: IoU(pred, truth) in xywh form, consuming channel-major pred
    truth_box = jnp.stack([tx, ty, tw, th], axis=-1)                # (B, T, 4)
    pred_ious = pred_truth_iou_cm(pred_cm, truth_box)               # (B, A, S, T)
    pred_ious = jnp.where(valid[:, None, None, :], pred_ious, -1.0)
    best_iou = jnp.max(pred_ious, axis=-1)                          # (B, A, S)
    obj_body = (~(best_iou > ignore_thre)).astype(jnp.float32).reshape(B, A, fsize, fsize)
    obj_mask = jnp.where(has_match[:, None, None, None], obj_body, 1.0)

    # ---- vectorized scatters over all (b, t) labels (torch uses a python loop) --------
    # NOTE: with duplicate (a,j,i) cells from different labels torch's "last wins" becomes
    # an unspecified winner here; classes accumulate identically in both versions.
    N = B * T
    sel = (valid & best_n_mask).reshape(N)
    b_idx = jnp.broadcast_to(jnp.arange(B)[:, None], (B, T)).reshape(N)
    a_idx = jnp.clip(best_n, 0, A - 1).reshape(N)
    i_idx = jnp.clip(ti_, 0, fsize - 1).reshape(N)
    # route non-selected labels to an out-of-bounds row; mode='drop' discards them
    j_idx = jnp.where(sel, jnp.clip(tj_, 0, fsize - 1).reshape(N), fsize)
    cls_idx = jnp.clip(labels[:, :, 4].astype(jnp.int32), 0, n_classes - 1).reshape(N)

    obj_mask = obj_mask.at[b_idx, a_idx, j_idx, i_idx].set(1.0, mode='drop')

    # combined mask tensor: tgt_mask on channels [0:4, 5:], obj_mask at channel 4
    mask_full = jnp.zeros((B, A, n_ch, fsize, fsize), jnp.float32)
    mask_full = mask_full.at[b_idx, a_idx, :, j_idx, i_idx].set(1.0, mode='drop')
    mask_full = mask_full.at[:, :, 4].set(obj_mask)

    scale_val = jnp.sqrt(2.0 - tw * th / fsize / fsize).reshape(N)
    tgt_scale_cm = jnp.zeros((B, A, 2, fsize, fsize), jnp.float32)
    tgt_scale_cm = tgt_scale_cm.at[b_idx, a_idx, :, j_idx, i_idx].set(
        jnp.broadcast_to(scale_val[:, None], (N, 2)), mode='drop')

    frac_x = (tx - ti_.astype(jnp.float32)).reshape(N)
    frac_y = (ty - tj_.astype(jnp.float32)).reshape(N)
    t2 = jnp.log(tw.reshape(N) / masked_anchors[a_idx, 0] + 1e-16)
    t3 = jnp.log(th.reshape(N) / masked_anchors[a_idx, 1] + 1e-16)
    ones = jnp.ones((N,), jnp.float32)
    vals = jnp.stack([frac_x, frac_y, t2, t3, ones, ones], axis=1)              # (N, 6)
    fixed = jnp.broadcast_to(jnp.arange(5, dtype=jnp.int32)[None, :], (N, 5))
    chs = jnp.concatenate([fixed, (5 + cls_idx)[:, None]], axis=1)              # (N, 6)
    bN = jnp.broadcast_to(b_idx[:, None], (N, 6))
    aN = jnp.broadcast_to(a_idx[:, None], (N, 6))
    jN = jnp.broadcast_to(j_idx[:, None], (N, 6))
    iN = jnp.broadcast_to(i_idx[:, None], (N, 6))
    target_cm = jnp.zeros((B, A, n_ch, fsize, fsize), jnp.float32)
    target_cm = target_cm.at[bN, aN, chs, jN, iN].set(vals, mode='drop')

    return mask_full, tgt_scale_cm, target_cm


# --------------------------------------------------------------------------------------
# Module setup + forward
# --------------------------------------------------------------------------------------

def make_yolo_cfg(n_classes=3, n_anchors=3, image_size=64):
    strides = [8, 16, 32]
    anchors = [[12, 16], [19, 36], [40, 28], [36, 75], [76, 55],
               [72, 146], [142, 110], [192, 243], [459, 401]]
    anch_masks = [[0, 1, 2], [3, 4, 5], [6, 7, 8]]
    masked_anchors, masked_anchors_np, ref_anchors = [], [], []
    for i in range(3):
        all_anchors_grid = [(w / strides[i], h / strides[i]) for w, h in anchors]
        ma = np.array([all_anchors_grid[j] for j in anch_masks[i]], dtype=np.float32)
        ra = np.zeros((len(all_anchors_grid), 4), dtype=np.float32)
        ra[:, 2:] = np.array(all_anchors_grid, dtype=np.float32)
        masked_anchors_np.append(ma)
        masked_anchors.append(jnp.asarray(ma))
        ref_anchors.append(jnp.asarray(ra))
    return dict(strides=strides, anch_masks=anch_masks, masked_anchors=masked_anchors,
                masked_anchors_np=masked_anchors_np, ref_anchors=ref_anchors,
                n_classes=n_classes, n_anchors=n_anchors, ignore_thre=0.4,
                image_size=image_size)


def yolo_loss_forward(xin, labels, cfg):
    # TODO(synk): torch's `assert not torch.isnan(output).any()` runtime check is omitted.
    n_classes = cfg['n_classes']
    A = cfg['n_anchors']
    n_ch = 5 + n_classes
    loss_xy = loss_wh = loss_obj = loss_cls = loss_l2 = jnp.float32(0.0)

    for output_id, output in enumerate(xin):
        B = output.shape[0]
        fs = output.shape[2]
        S = fs * fs
        TN = S if S <= 2048 else 2048          # lane tile; 2048 fits v7x's 64 MiB VMEM

        # NCHW is already channel-major with the spatial axis contiguous:
        # (B, A*n_ch, fs, fs) -> (B, A, n_ch, fs*fs) is a pure reshape (no transpose).
        raw = output.reshape(B, A, n_ch, S).astype(jnp.float32)

        pred_cm = decode_pallas(raw, fs, cfg['masked_anchors_np'][output_id], TN)

        mask_full, tgt_scale_cm, target_cm = build_target_jax(
            pred_cm, labels, B, fs, n_ch, output_id, cfg)

        losses = loss_pallas(
            raw,
            target_cm.reshape(B, A, n_ch, S),
            mask_full.reshape(B, A, n_ch, S),
            tgt_scale_cm.reshape(B, A, 2, S),
            S, TN)
        loss_xy = loss_xy + losses[0]
        loss_wh = loss_wh + losses[1]
        loss_obj = loss_obj + losses[2]
        loss_cls = loss_cls + losses[3]
        loss_l2 = loss_l2 + losses[4]

    loss = loss_xy + loss_wh + loss_obj + loss_cls
    return loss, loss_xy, loss_wh, loss_obj, loss_cls, loss_l2


# --------------------------------------------------------------------------------------
# Main
# --------------------------------------------------------------------------------------

if __name__ == "__main__":
    B = 2
    n_classes = 3          # small synthetic class count -> n_ch = 8
    n_anchors = 3
    image_size = 64        # divisible by all strides; fsizes = [8, 4, 2]
    T = 4                  # max labels per image
    cfg = make_yolo_cfg(n_classes=n_classes, n_anchors=n_anchors, image_size=image_size)
    n_ch = 5 + n_classes

    key = jax.random.PRNGKey(0)
    k_out = jax.random.split(key, 3)
    k_cxy, k_wh, k_cls = jax.random.split(jax.random.fold_in(key, 7), 3)

    # three detection heads (PyTorch NCHW conv outputs)
    xin = []
    for s_idx, stride in enumerate(cfg['strides']):
        fs = image_size // stride
        xin.append(0.5 * jax.random.normal(k_out[s_idx],
                                           (B, n_anchors * n_ch, fs, fs), jnp.float32))

    # labels: (B, T, 5) = [x1, y1, x2, y2, class] in image coordinates, valid rows first
    cxy = jax.random.uniform(k_cxy, (B, T, 2), minval=10.0, maxval=54.0)
    wh = jax.random.uniform(k_wh, (B, T, 2), minval=6.0, maxval=40.0)
    cls = jax.random.randint(k_cls, (B, T, 1), 0, n_classes).astype(jnp.float32)
    x1y1 = jnp.clip(cxy - wh / 2.0, 0.0, image_size - 1.0)
    x2y2 = jnp.clip(cxy + wh / 2.0, 1.0, float(image_size))
    labels = jnp.concatenate([x1y1, x2y2, cls], axis=-1)
    labels = labels.at[1, T - 1, :].set(0.0)   # second image has one fewer label

    result = yolo_loss_forward(xin, labels, cfg)
    result = jax.block_until_ready(result)
    print("KERNEL_OK")
</pallas_src>

<mosaic_0001>
module attributes {stable_mosaic.version = 11 : i64} {
  func.func @kernel(%arg0: i32, %arg1: i32, %arg2: i32, %arg3: memref<1x1x8x64xf32, #tpu.memory_space<vmem>>, %arg4: memref<1x1x4x64xf32, #tpu.memory_space<vmem>>) attributes {dimension_semantics = [#tpu.dimension_semantics<parallel>, #tpu.dimension_semantics<parallel>, #tpu.dimension_semantics<parallel>], iteration_bounds = array<i64: 2, 3, 1>, scalar_prefetch = 0 : i64, scratch_operands = 0 : i64, tpu.core_type = #tpu.core_type<tc>, window_params = [{transform_indices = @transform_0, window_bounds = array<i64: 1, 1, 8, 64>}, {transform_indices = @transform_1, window_bounds = array<i64: 1, 1, 4, 64>}]} {
    %c1_i32 = arith.constant 1 : i32
    %0 = arith.cmpi eq, %arg1, %c1_i32 : i32
    %cst = arith.constant 2.375000e+00 : f32
    %cst_0 = arith.constant 5.000000e+00 : f32
    %1 = arith.select %0, %cst, %cst_0 : f32
    %c1_i32_1 = arith.constant 1 : i32
    %2 = arith.cmpi eq, %arg1, %c1_i32_1 : i32
    %cst_2 = arith.constant 4.500000e+00 : f32
    %cst_3 = arith.constant 3.500000e+00 : f32
    %3 = arith.select %2, %cst_2, %cst_3 : f32
    %c0_i32 = arith.constant 0 : i32
    %4 = arith.cmpi eq, %arg1, %c0_i32 : i32
    %cst_4 = arith.constant 1.500000e+00 : f32
    %5 = arith.select %4, %cst_4, %1 : f32
    %c0_i32_5 = arith.constant 0 : i32
    %6 = arith.cmpi eq, %arg1, %c0_i32_5 : i32
    %cst_6 = arith.constant 2.000000e+00 : f32
    %7 = arith.select %6, %cst_6, %3 : f32
    %8 = tpu.iota {dimensions = array<i32: 1>} : vector<1x64xi32>
    %c64_i32 = arith.constant 64 : i32
    %9 = arith.muli %arg2, %c64_i32 : i32
    %10 = vector.broadcast %9 : i32 to vector<1x64xi32>
    %11 = arith.addi %8, %10 : vector<1x64xi32>
    %12 = arith.sitofp %11 : vector<1x64xi32> to vector<1x64xf32>
    %cst_7 = arith.constant 1.250000e-01 : f32
    %13 = vector.broadcast %cst_7 : f32 to vector<1x64xf32>
    %14 = arith.mulf %12, %13 : vector<1x64xf32>
    %15 = math.floor %14 : vector<1x64xf32>
    %16 = arith.fptosi %15 : vector<1x64xf32> to vector<1x64xi32>
    %c8_i32 = arith.constant 8 : i32
    %17 = vector.broadcast %c8_i32 : i32 to vector<1x64xi32>
    %18 = arith.muli %16, %17 : vector<1x64xi32>
    %19 = arith.subi %11, %18 : vector<1x64xi32>
    %c8_i32_8 = arith.constant 8 : i32
    %20 = vector.broadcast %c8_i32_8 : i32 to vector<1x64xi32>
    %21 = arith.cmpi sge, %19, %20 : vector<1x64xi32>
    %22 = arith.extui %21 : vector<1x64xi1> to vector<1x64xi32>
    %23 = arith.addi %16, %22 : vector<1x64xi32>
    %c0_i32_9 = arith.constant 0 : i32
    %24 = vector.broadcast %c0_i32_9 : i32 to vector<1x64xi32>
    %25 = arith.cmpi slt, %19, %24 : vector<1x64xi32>
    %26 = arith.extui %25 : vector<1x64xi1> to vector<1x64xi32>
    %27 = arith.subi %23, %26 : vector<1x64xi32>
    %c8_i32_10 = arith.constant 8 : i32
    %28 = vector.broadcast %c8_i32_10 : i32 to vector<1x64xi32>
    %29 = arith.muli %27, %28 : vector<1x64xi32>
    %30 = arith.subi %11, %29 : vector<1x64xi32>
    %31 = arith.sitofp %30 : vector<1x64xi32> to vector<1x64xf32>
    %32 = arith.sitofp %27 : vector<1x64xi32> to vector<1x64xf32>
    %c0 = arith.constant 0 : index
    %c0_11 = arith.constant 0 : index
    %c0_12 = arith.constant 0 : index
    %c0_13 = arith.constant 0 : index
    %33 = vector.load %arg3[%c0, %c0_11, %c0_12, %c0_13] : memref<1x1x8x64xf32, #tpu.memory_space<vmem>>, vector<1x1x4x64xf32>
    %34 = vector.shape_cast %33 : vector<1x1x4x64xf32> to vector<4x64xf32>
    %35 = vector.extract_strided_slice %34 {offsets = [0, 0], sizes = [1, 64], strides = [1, 1]} : vector<4x64xf32> to vector<1x64xf32>
    %36 = arith.negf %35 : vector<1x64xf32>
    %37 = math.exp %36 : vector<1x64xf32>
    %cst_14 = arith.constant 1.000000e+00 : f32
    %38 = vector.broadcast %cst_14 : f32 to vector<1x64xf32>
    %39 = arith.addf %38, %37 : vector<1x64xf32>
    %40 = arith.divf %38, %39 : vector<1x64xf32>
    %41 = arith.addf %40, %31 : vector<1x64xf32>
    %c0_15 = arith.constant 0 : index
    %c0_16 = arith.constant 0 : index
    %c0_17 = arith.constant 0 : index
    %c0_18 = arith.constant 0 : index
    %42 = vector.load %arg4[%c0_15, %c0_16, %c0_17, %c0_18] : memref<1x1x4x64xf32, #tpu.memory_space<vmem>>, vector<1x1x1x64xf32>
    %43 = vector.shape_cast %42 : vector<1x1x1x64xf32> to vector<1x64xf32>
    %44 = vector.shape_cast %41 : vector<1x64xf32> to vector<1x1x1x64xf32>
    tpu.vector_store %arg4[%c0_15, %c0_16, %c0_17, %c0_18], %44 {strides = array<i32>} : memref<1x1x4x64xf32, #tpu.memory_space<vmem>>, vector<1x1x1x64xf32>,
    %45 = vector.extract_strided_slice %34 {offsets = [1, 0], sizes = [1, 64], strides = [1, 1]} : vector<4x64xf32> to vector<1x64xf32>
    %46 = arith.negf %45 : vector<1x64xf32>
    %47 = math.exp %46 : vector<1x64xf32>
    %cst_19 = arith.constant 1.000000e+00 : f32
    %48 = vector.broadcast %cst_19 : f32 to vector<1x64xf32>
    %49 = arith.addf %48, %47 : vector<1x64xf32>
    %50 = arith.divf %48, %49 : vector<1x64xf32>
    %51 = arith.addf %50, %32 : vector<1x64xf32>
    %c0_20 = arith.constant 0 : index
    %c0_21 = arith.constant 0 : index
    %c1 = arith.constant 1 : index
    %c0_22 = arith.constant 0 : index
    %52 = vector.load %arg4[%c0_20, %c0_21, %c1, %c0_22] : memref<1x1x4x64xf32, #tpu.memory_space<vmem>>, vector<1x1x1x64xf32>
    %53 = vector.shape_cast %52 : vector<1x1x1x64xf32> to vector<1x64xf32>
    %54 = vector.shape_cast %51 : vector<1x64xf32> to vector<1x1x1x64xf32>
    tpu.vector_store %arg4[%c0_20, %c0_21, %c1, %c0_22], %54 {strides = array<i32>} : memref<1x1x4x64xf32, #tpu.memory_space<vmem>>, vector<1x1x1x64xf32>,
    %55 = vector.extract_strided_slice %34 {offsets = [2, 0], sizes = [1, 64], strides = [1, 1]} : vector<4x64xf32> to vector<1x64xf32>
    %56 = math.exp %55 : vector<1x64xf32>
    %57 = vector.broadcast %5 : f32 to vector<1x64xf32>
    %58 = arith.mulf %56, %57 : vector<1x64xf32>
    %c0_23 = arith.constant 0 : index
    %c0_24 = arith.constant 0 : index
    %c2 = arith.constant 2 : index
    %c0_25 = arith.constant 0 : index
    %59 = vector.load %arg4[%c0_23, %c0_24, %c2, %c0_25] : memref<1x1x4x64xf32, #tpu.memory_space<vmem>>, vector<1x1x1x64xf32>
    %60 = vector.shape_cast %59 : vector<1x1x1x64xf32> to vector<1x64xf32>
    %61 = vector.shape_cast %58 : vector<1x64xf32> to vector<1x1x1x64xf32>
    tpu.vector_store %arg4[%c0_23, %c0_24, %c2, %c0_25], %61 {strides = array<i32>} : memref<1x1x4x64xf32, #tpu.memory_space<vmem>>, vector<1x1x1x64xf32>,
    %62 = vector.extract_strided_slice %34 {offsets = [3, 0], sizes = [1, 64], strides = [1, 1]} : vector<4x64xf32> to vector<1x64xf32>
    %63 = math.exp %62 : vector<1x64xf32>
    %64 = vector.broadcast %7 : f32 to vector<1x64xf32>
    %65 = arith.mulf %63, %64 : vector<1x64xf32>
    %c0_26 = arith.constant 0 : index
    %c0_27 = arith.constant 0 : index
    %c3 = arith.constant 3 : index
    %c0_28 = arith.constant 0 : index
    %66 = vector.load %arg4[%c0_26, %c0_27, %c3, %c0_28] : memref<1x1x4x64xf32, #tpu.memory_space<vmem>>, vector<1x1x1x64xf32>
    %67 = vector.shape_cast %66 : vector<1x1x1x64xf32> to vector<1x64xf32>
    %68 = vector.shape_cast %65 : vector<1x64xf32> to vector<1x1x1x64xf32>
    tpu.vector_store %arg4[%c0_26, %c0_27, %c3, %c0_28], %68 {strides = array<i32>} : memref<1x1x4x64xf32, #tpu.memory_space<vmem>>, vector<1x1x1x64xf32>,
    return
  }
  func.func @transform_0(%arg0: i32, %arg1: i32, %arg2: i32) -> (i32, i32, i32, i32) {
    %c0_i32 = arith.constant 0 : i32
    %c0_i32_0 = arith.constant 0 : i32
    return %arg0, %arg1, %c0_i32, %arg2 : i32, i32, i32, i32
  }
  func.func @transform_1(%arg0: i32, %arg1: i32, %arg2: i32) -> (i32, i32, i32, i32) {
    %c0_i32 = arith.constant 0 : i32
    %c0_i32_0 = arith.constant 0 : i32
    return %arg0, %arg1, %c0_i32, %arg2 : i32, i32, i32, i32
  }
}

</mosaic_0001>

<bundles_post_ra>
// kernel: tpu_custom_call.1
= control target key start
LH: loop header
LB: loop body
LE: loop exit
PB: predicated region body
PF: predicated region fallthrough
CT: control target
= control target key end

     0   :  { %6 = vsyncpa [#allocation3], 0  ;;  %s760_s0 = inlined_call_operand.hbm [shape: f32[2,3,8,64], index: 0, kind: input, shape index: {}]   ;;  %s761_s1 = inlined_call_operand.hbm [shape: f32[2,3,4,64], index: 1, kind: output, shape index: {}]  }
   0x1   :  { %8 = vsyncpa [#allocation3 + $0x1], 0 }
   0x2   :  { %9 = vsyncpa [#allocation4], 0 }
   0x3   :  { %11 = vsyncpa [#allocation4 + $0x1], 0  ;;  %s565_s6 = smov 0   ;;  %s567_s7 = smov 0  }
   0x4   :  { %s569_s8 = smov 0   ;;  %s571_s9 = smov 0  }
   0x5   :  { %s573_s10 = smov 0   ;;  %s575_s11 = smov 0  }
   0x6   :  { %s577_s12 = smov 0   ;;  %s579_s13 = smov 0  }
   0x7 LB: > { %s319_s14 = sadd.s32 4294967295, %s550_s13   ;;  %s320_s15 = sadd.s32 4294967294, %s550_s13   ;;  %s550_s13 = sphi %s579_s13, %s17_s13   ;;  %s546_s12 = sphi %s577_s12, %s777_s12   ;;  %s542_s11 = sphi %s575_s11, %s776_s11   ;;  %s538_s10 = sphi %s573_s10, %s775_s10   ;;  %s534_s9 = sphi %s571_s9, %s774_s9   ;;  %s530_s8 = sphi %s569_s8, %s773_s8   ;;  %s526_s7 = sphi %s567_s7, %s772_s7   ;;  %s522_s6 = sphi %s565_s6, %s771_s6  }
   0x8   : > { %s32_s16 = sadd.s32 1, %s542_s11  ;;  %s36_s17 = sadd.s32 1, %s546_s12 }
   0x9   : > { %p34_p0 = scmp.ge.s32.totalorder %s32_s16, 3  ;;  %s47_s18 = sadd.s32 1, %s530_s8 }
   0xa   : > { %p54_p1 = scmp.ne.s32.totalorder %s530_s8, %s526_s7  ;;  %p55_p2 = scmp.eq.s32.totalorder %s550_s13, 0 }
   0xb   : > { %s779_s16 = smov (%p34_p0, %s32_s16), 0  ;;  %s781_s17 = smov (!%p34_p0, %s36_s17), %s546_s12 }
   0xc   : > { %s41_s19 = ssub.s32 %s542_s11, %s779_s16  ;;  %p618_p3 = por %p55_p2, %p54_p1 }
   0xd   : > { %p38_p4 = scmp.ge.s32.totalorder %s781_s17, 2  ;;  %p60_p5 = scmp.ne.s32.totalorder %s526_s7, %s522_s6 }
   0xe   : > { %p61_p6 = scmp.eq.s32.totalorder %s319_s14, 0  ;;  %p88_p7 = scmp.eq.s32.totalorder %s319_s14, 5 }
   0xf   : > { %s783_s17 = smov (%p38_p4, %s781_s17), 0  ;;  %p94_p10 = scmp.eq.s32.totalorder %s320_s15, 5 }
  0x10   : > { %p626_p8 = por %p61_p6, %p60_p5  ;;  %p630_p9 = por %p88_p7, %p54_p1 }
  0x11   : > { %s40_s23 = ssub.s32 %s546_s12, %s783_s17  ;;  %p636_p12 = por %p94_p10, %p60_p5 }
  0x12   : > { %s765_s22 = scalar_select %p630_p9, 1, 0 }
  0x13   : > { %s42_s24 = sor.u32 %s41_s19, %s40_s23  ;;  %p349_p13 = scmp.lt.s32.totalorder %s550_s13, 6 }
  0x14   : > { %p45_p11 = scmp.eq.s32.totalorder %s42_s24, 0  ;;  %s114_s26 = sand.u32 1, %s530_s8  }
  0x15   : > { %s766_s25 = scalar_select %p636_p12, 1, 0 }
  0x16   : > { %s643_s27 = scalar_select %p45_p11, %s530_s8, %s47_s18  }
  0x17   : > { %s323_s28 = sshll.u32 %s114_s26, 3  ;;  %s333_s29 = smul.u32 3, %s546_s12 }
  0x18   : > { %s118_s30 = scalar_lea.vmem [#allocation2], %s323_s28  ;;  %p648_p0 = pnand %p349_p13, %p618_p3 }
  0x19   : > { %s128_s2 = sshll.u32 %s118_s30, 4  ;;  %s124_s4 = sadd.s32 %s542_s11, %s333_s29  ;;  %s653_s2 = int_to_ptr.vmem [resolvable:$true] %s128_s2 }
  0x1a   : > { %s324_s5 = sshll.u32 %s124_s4, 7  ;;  %s115_s19 = scalar_lea.sflag [#allocation3], %s114_s26 }
  0x1b   : > { %s658_s18 = scalar_lea.hbm %s760_s0, %s324_s5  ;;  %p424_p3 = pneg %p648_p0 }
  0x1c   : > { %s422_s20 = scalar_lea.hbm %s658_s18, 128  ;;  %s427_s28 = scalar_lea.hbm %s760_s0, 768 }
  0x1d   : > { %p423_p2 = scmp.ne.s32.totalorder %s658_s18, %s422_s20  ;;  %p428_p6 = scmp.lt.u32.totalorder %s658_s18, %s760_s0 }
  0x1e   : > { %p429_p7 = scmp.lt.u32.totalorder %s427_s28, %s422_s20  ;;  %p431_p11 = scmp.lt.u32.totalorder %s422_s20, %s658_s18 }
  0x1f   : > { %p425_p4 = pnand %p424_p3, %p423_p2 }
  0x20   : > { %p430_p10 = por %p429_p7, %p428_p6 }
  0x21   : > { %p426_p5 = pneg %p425_p4 }
  0x22   : > { %p432_p13 = por %p431_p11, %p430_p10 }
  0x24   : > { %p433_p1 = pnand %p432_p13, %p426_p5 }
  0x26   : > { %436 = shalt.err (!%p433_p1)
}
  0x27   : > { %s437_s26 = scalar_lea.vmem %s653_s2, 128  ;;  %s552_s4 = smov [#allocation2]  }
  0x28   : > { %p438_p2 = scmp.ne.s32.totalorder %s653_s2, %s437_s26  ;;  %s442_s5 = sshll.u32 %s552_s4, 4  ;;  %s443_s5 = int_to_ptr.vmem [resolvable:$false] %s442_s5 }
  0x29   : > { %s444_s14 = scalar_lea.vmem %s443_s5, 256  ;;  %p445_p9 = scmp.lt.s32.totalorder %s653_s2, %s443_s5 }
  0x2a   : > { %p440_p4 = pnand %p438_p2, %p424_p3  ;;  %p446_p6 = scmp.lt.s32.totalorder %s444_s14, %s437_s26 }
  0x2c   : > { %p441_p12 = pneg %p440_p4  ;;  %p447_p7 = por %p446_p6, %p445_p9 }
  0x2e   : > { %p448_p10 = pnand %p447_p7, %p441_p12 }
  0x30   : > { %451 = shalt.err (!%p448_p10)
}
  0x31   : > { %344 = dma.hbm_to_vmem [thread:$0]  (!%p648_p0), %s658_s18, 128, %s653_s2, %s115_s19  }
  0x32   : > { %p133_p1 = scmp.lt.s32.totalorder %s550_s13, 7  ;;  %p768_p5 = scmp.ge.s32.totalorder %s550_s13, 1 }
  0x34   : > { %p134_p3 = pnand %p768_p5, %p133_p1 }
  0x35   : > { %s690_s15 = sand.u32 (!%p134_p3), 1, %s526_s7  }
  0x36   : > { %137 = sbr.rel (%p134_p3) target bundleno = 108 (0x6c), region = 24  ;;  %s326_s20 = sshll.u32 (!%p134_p3), %s690_s15, 3 }
  0x37   : > { %s140_s23 = scalar_lea.sflag (!%p134_p3), [#allocation3], %s690_s15  ;;  %s143_s24 = scalar_lea.vmem (!%p134_p3), [#allocation2], %s326_s20 }
  0x3d   : > { %513 = dma.done.wait (%p626_p8), %s140_s23, 128  }
  0x3e   : > { %515 = vsyncadd (%p626_p8), %s140_s23, 4294967168  ;;  %v168_v0 = vlaneseq  ;;  %p162_p9 = scmp.eq.s32.totalorder %s534_s9, 1  ;;  %v189_v4 = vld [vmem:[%s143_s24] sm:$0xf]  ;;  %p165_p12 = scmp.eq.s32.totalorder %s534_s9, 0  ;;  %v553_v12 = vmov 0  }
  0x3f   : > { %v328_v6 = vmul.f32 -1.442695, %v189_v4  ;;  %v202_v7 = vmul.f32 1.442695, %v189_v4  ;;  %s327_s21 = sshll.u32 %s690_s15, 2  ;;  %vm206_vm2 = vcmask 518146  }
  0x40   : > { %v169_v1 = vand.u32 127, %v168_v0  ;;  %s163_s2 = scalar_select %p162_p9, 2.375, 5.0  ;;  %vm210_vm3 = vcmask 519171   ;;  %vm197_vm4 = vcmask 516096   ;;  %vm200_vm5 = vcmask 517121  }
  0x41   : > { %416 = vpow2.f32 %v328_v6  ;;  %s164_s3 = scalar_select %p162_p9, 4.5, 3.5 }
  0x42   : > { %v173_v2 = vcvt.s32.f32 %v169_v1  ;;  %418 = vpow2.f32 %v202_v7  ;;  %s785_s2 = smov (%p165_p12, %s163_s2), 1.5  ;;  %s161_s18 = scalar_lea.vmem [#allocation5], %s327_s21 }
  0x43   : > { %s787_s3 = smov (%p165_p12, %s164_s3), 2.0  ;;  %v204_v15 = vstv %s785_s2  ;;  %s336_s19 = smul.u32 3, %s538_s10 }
  0x44   : > { %v174_v3 = vmul.f32 0.125, %v173_v2  ;;  %v208_v16 = vstv %s787_s3  ;;  %s229_s29 = sshll.u32 %s161_s18, 4  ;;  %p769_p0 = scmp.ne.s32.totalorder %s765_s22, 0  ;;  %s703_s29 = int_to_ptr.vmem [resolvable:$true] %s229_s29 }
  0x45   : > { %s225_s28 = sadd.s32 %s534_s9, %s336_s19  ;;  %s213_s9 = scalar_lea.sflag [#allocation4], %s690_s15 }
  0x46   : > { %v175_v5 = vfloor.f32 %v174_v3  ;;  %s330_s30 = sshll.u32 %s225_s28, 6  ;;  %s452_s5 = scalar_lea.vmem %s703_s29, 64 }
  0x47   : > { %s708_s4 = scalar_lea.hbm %s761_s1, %s330_s30  ;;  %p453_p8 = scmp.ne.s32.totalorder %s703_s29, %s452_s5 }
  0x48   : > { %v334_v8 = vtrunc.f32 %v175_v5  ;;  %s554_s14 = smov [#allocation5]  }
  0x49   : > { %p454_p11 = pnand %p453_p8, %p769_p0  ;;  %s456_s20 = sshll.u32 %s554_s14, 4  ;;  %s457_s20 = int_to_ptr.vmem [resolvable:$false] %s456_s20 }
  0x4a   : > { %v335_v9 = vcvt.f32.s32 %v334_v8  ;;  %s458_s23 = scalar_lea.vmem %s457_s20, 128  ;;  %p459_p2 = scmp.lt.s32.totalorder %s703_s29, %s457_s20 }
  0x4b   : > { %v417_v17 = vpop.eup %416  ;;  %p455_p13 = pneg %p454_p11  ;;  %p460_p4 = scmp.lt.s32.totalorder %s458_s23, %s452_s5 }
  0x4c   : > { %v177_v10 = vmul.u32 8, %v335_v9  ;;  %v419_v19 = vpop.eup %418  ;;  %v193_v20 = vadd.f32 1.0, %v417_v17 }
  0x4d   : > { %v205_v22 = vmul.f32 %v419_v19, %v204_v15  ;;  %v209_v23 = vmul.f32 %v419_v19, %v208_v16  ;;  %p461_p6 = por %p460_p4, %p459_p2 }
  0x4e   : > { %v178_v11 = vsub.s32 %v169_v1, %v177_v10  ;;  %420 = vrcp.f32 %v193_v20 }
  0x4f   : > { %207 = vst.msk [vmem:[%s161_s18] sm:$0x4] %vm206_vm2, %v205_v22  ;;  %p462_p7 = pnand %p461_p6, %p455_p13 }
  0x50   : > { %vm179_vm0 = vcmp.ge.s32.totalorder %v178_v11, 8  ;;  %vm182_vm1 = vcmp.lt.s32.totalorder %v178_v11, 0  ;;  %211 = vst.msk [vmem:[%s161_s18] sm:$0x8] %vm210_vm3, %v209_v23 }
  0x51   : > { %v180_v13 = vsel %vm179_vm0, 1, %v553_v12  ;;  %v183_v14 = vsel %vm182_vm1, 1, %v553_v12 }
  0x52   : > { %v181_v18 = vadd.s32 %v335_v9, %v180_v13 }
  0x54   : > { %v184_v21 = vsub.s32 %v181_v18, %v183_v14 }
  0x56   : > { %v185_v24 = vmul.u32 8, %v184_v21  ;;  %v188_v27 = vcvt.s32.f32 %v184_v21 }
  0x58   : > { %v186_v25 = vsub.s32 %v169_v1, %v185_v24  ;;  %v421_v28 = vpop.eup %420 }
  0x59   : > { %v199_v30 = vadd.f32 %v421_v28, %v188_v27 }
  0x5a   : > { %v187_v26 = vcvt.s32.f32 %v186_v25 }
  0x5b   : > { %201 = vst.msk [vmem:[%s161_s18] sm:$0x2] %vm200_vm5, %v199_v30 }
  0x5c   : > { %v196_v29 = vadd.f32 %v421_v28, %v187_v26 }
  0x5e   : > { %198 = vst.msk [vmem:[%s161_s18] sm:$0x1] %vm197_vm4, %v196_v29 }
  0x5f   : > { %465 = shalt.err (!%p462_p7)
}
  0x60   : > { %s466_s15 = scalar_lea.hbm %s708_s4, 64  ;;  %s470_s3 = scalar_lea.hbm %s761_s1, 384 }
  0x61   : > { %p467_p10 = scmp.ne.s32.totalorder %s708_s4, %s466_s15  ;;  %p471_p3 = scmp.lt.u32.totalorder %s708_s4, %s761_s1 }
  0x62   : > { %p472_p9 = scmp.lt.u32.totalorder %s470_s3, %s466_s15  ;;  %p474_p8 = scmp.lt.u32.totalorder %s466_s15, %s708_s4 }
  0x63   : > { %p468_p1 = pnand %p467_p10, %p769_p0 }
  0x64   : > { %p473_p12 = por %p472_p9, %p471_p3 }
  0x65   : > { %p469_p5 = pneg %p468_p1 }
  0x66   : > { %p475_p11 = por %p474_p8, %p473_p12 }
  0x68   : > { %p476_p13 = pnand %p475_p11, %p469_p5 }
  0x6a   : > { %479 = shalt.err (!%p476_p13)
}
  0x6b   : > { %339 = dma.vmem_to_hbm [thread:$0]  (%p769_p0), %s703_s29, 64, %s708_s4, %s213_s9  }
  0x6c PF: > { %p350_p2 = scmp.ge.s32.totalorder %s550_s13, 2  ;;  %s241_s19 = sand.u32 1, %s522_s6  }
  0x6d   : > { %p770_p4 = scmp.ne.s32.totalorder %s766_s25, 0  ;;  %s242_s28 = scalar_lea.sflag [#allocation4], %s241_s19 }
  0x6f   : > { %p346_p6 = pnand %p350_p2, %p770_p4 }
  0x71   : > { %517 = dma.done.wait (!%p346_p6), %s242_s28, 64  }
  0x72   : > { %519 = vsyncadd (!%p346_p6), %s242_s28, 4294967232  ;;  %s17_s13 = sadd.s32 1, %s550_s13   ;;  %s771_s6 = smov %s526_s7 }
  0x73   : > { %p14_p7 = scmp.ge.s32.totalorder %s17_s13, 8   ;;  %s772_s7 = smov %s530_s8 }
  0x74   : > { %s773_s8 = smov %s643_s27  ;;  %s774_s9 = smov %s542_s11 }
  0x75   : > { %s775_s10 = smov %s546_s12  ;;  %s776_s11 = smov %s779_s16 }
  0x76   : > { %s777_s12 = smov %s783_s17  ;;  %16 = sbr.rel (!%p14_p7) target bundleno = 7 (0x7), region = 69 }
  0x7d   :  { %247 = vsyncpa [#allocation3], 1 }
  0x7e   :  { %249 = vsyncpa [#allocation3 + $0x1], 1 }
  0x7f   :  { %250 = vsyncpa [#allocation4], 1 }
  0x80   :  { %252 = vsyncpa [#allocation4 + $0x1], 1 }

</bundles_post_ra>
